<compile_context>
chip_gen: v5e
topology: v5e:2x2
jax: 0.10.0
libtpu: 0.0.40
codegen_flags: <defaults>
</compile_context>

<pallas_src>
import numpy as np
import jax
import jax.numpy as jnp
from jax.experimental import pallas as pl
from jax.experimental.pallas import tpu as pltpu


# ----------------------------- noise schedule (plain numpy glue) -------------
def make_beta_schedule(schedule, n_timestep, linear_start=1e-4, linear_end=2e-2):
    if schedule == "linear":
        betas = np.linspace(linear_start, linear_end, n_timestep, dtype=np.float64)
    elif schedule == "quad":
        betas = np.linspace(linear_start ** 0.5, linear_end ** 0.5,
                            n_timestep, dtype=np.float64) ** 2
    else:
        raise NotImplementedError(schedule)
    return betas


# ----------------------------- Pallas kernel ---------------------------------
def _p_losses_kernel(alpha_ref, sigma_ref, film_ref, bias_ref,
                     hr_ref, sr_ref, noise_ref,
                     w_sr_ref, w_xn_ref,
                     loss_ref):
    """Grid = (batch_tiles, spatial_outer[parallel], spatial_inner[reduce]).

    hr/sr/noise refs : (TB*C, T_HW) f32 image tiles (no pre-cast pass)
    alpha/sigma/film/bias : (TB*C, 1) f32 per-row coefficients
    w_sr, w_xn       : (TB*C, TB*C) bf16 block-diagonal 1x1-conv weights
    loss_ref         : (1, 1, 1) f32 partial loss, resident across the inner
                       (reduction) spatial axis only.
    """
    si = pl.program_id(2)

    hr = hr_ref[...]            # f32
    sr = sr_ref[...]            # f32
    noise = noise_ref[...]      # f32

    # q_sample: x_noisy = a * x_start + sqrt(1 - a^2) * noise
    # (sigma precomputed per row in the wrapper -> no in-kernel sqrt).
    x_noisy = alpha_ref[...] * hr + sigma_ref[...] * noise

    # synthetic denoise_fn(cat([SR, x_noisy], dim=1), noise_level):
    # block-diagonal 1x1 conv (batch packed into sublanes), bf16 MXU path,
    # then FiLM by the noise level (film = 1 + gamma*a, precomputed per row).
    h = jnp.dot(w_sr_ref[...], sr.astype(jnp.bfloat16),
                preferred_element_type=jnp.float32)
    h = h + jnp.dot(w_xn_ref[...], x_noisy.astype(jnp.bfloat16),
                    preferred_element_type=jnp.float32)
    x_recon = h * film_ref[...] + bias_ref[...]

    # Per-step L1 reduce (XLU) accumulated into the resident output block.
    step_sum = jnp.sum(jnp.abs(noise - x_recon))

    @pl.when(si == 0)
    def _():
        loss_ref[...] = jnp.zeros_like(loss_ref) + step_sum

    @pl.when(si > 0)
    def _():
        loss_ref[...] = loss_ref[...] + step_sum


# ----------------------------- tiling / budgets -------------------------------
def _vmem_budget():
    """Generation-aware (vmem_limit_bytes, max bytes per f32 stream tile)."""
    try:
        cap = int(pltpu.get_tpu_info().vmem_capacity_bytes)
    except Exception:
        cap = None
    if cap is None:
        # Conservative fallback (safe on every generation).
        return 32 * 1024 * 1024, 3 * 1024 * 1024
    if cap <= 64 * 1024 * 1024:                 # v7x: 64 MiB per TensorCore
        return 36 * 1024 * 1024, 3 * 1024 * 1024
    return 96 * 1024 * 1024, 6 * 1024 * 1024    # v5e / v6e: 128 MiB


def _pick_tiles(B, C, HW, max_tile_bytes):
    """Returns (tb, row_tile, n_bt, t_hw, n_sp_outer, n_sp_inner)."""
    # Largest batch tile with TB*C a multiple of 8 (f32 sublanes), row_tile<=128
    # (MXU-native shape, keeps the kron block-diag weight small).
    tb = None
    for cand in range(B, 0, -1):
        if B % cand == 0 and (cand * C) % 8 == 0 and cand * C <= 128:
            tb = cand
            break
    if tb is None:
        tb = B  # block rows == full dim is always a legal block shape
    row_tile = tb * C
    n_bt = B // tb

    # Spatial tile: largest multiple-of-128 divisor of HW under the per-stream
    # VMEM budget (f32 storage, 4 B/elem).
    t_hw = HW
    if HW % 128 == 0:
        while (row_tile * t_hw * 4 > max_tile_bytes
               and t_hw % 2 == 0 and (t_hw // 2) % 128 == 0):
            t_hw //= 2
        # v7x has 2 TensorCores: guarantee >= 2 parallel iterations when the
        # batch axis collapses to a single tile.
        if n_bt == 1 and t_hw == HW and HW % 256 == 0:
            t_hw = HW // 2
    n_steps = HW // t_hw

    if n_bt == 1 and n_steps >= 2 and n_steps % 2 == 0:
        n_sp_outer = 2
    else:
        n_sp_outer = 1
    n_sp_inner = n_steps // n_sp_outer
    return tb, row_tile, n_bt, t_hw, n_sp_outer, n_sp_inner


# ----------------------------- wrapper ----------------------------------------
def gaussian_diffusion_p_losses(hr, sr, noise, cont_sqrt_alpha, w, bias, gamma):
    """hr/sr/noise: (B, C, H, W) NCHW f32; cont_sqrt_alpha: (B,);
    w: (C, 2C) 1x1-conv weight; bias, gamma: (C, 1)."""
    B, C, H, W = hr.shape
    HW = H * W
    rows = B * C

    vmem_limit, max_tile_bytes = _vmem_budget()
    tb, row_tile, n_bt, t_hw, n_so, n_si = _pick_tiles(B, C, HW, max_tile_bytes)

    # f32 image streams straight from the producer (no extra bf16 cast pass).
    hr_f = hr.reshape(rows, HW)
    sr_f = sr.reshape(rows, HW)
    noise_f = noise.reshape(rows, HW)

    # Per-row coefficient vectors (f32): alpha, sigma, FiLM scale, bias.
    a = cont_sqrt_alpha.astype(jnp.float32)
    alpha_rows = jnp.repeat(a, C).reshape(rows, 1)
    sigma_rows = jnp.sqrt(jnp.maximum(0.0, 1.0 - alpha_rows * alpha_rows))
    gamma_rows = jnp.tile(gamma.reshape(-1).astype(jnp.float32), B).reshape(rows, 1)
    bias_rows = jnp.tile(bias.reshape(-1).astype(jnp.float32), B).reshape(rows, 1)
    film_rows = 1.0 + gamma_rows * alpha_rows

    # Block-diagonal 1x1-conv weights (batch packed into sublanes), bf16 for the
    # native MXU path.  row_tile is capped at 128 so this stays tiny.
    w = w.astype(jnp.float32)
    eye_tb = jnp.eye(tb, dtype=jnp.float32)
    w_sr_big = jnp.kron(eye_tb, w[:, :C]).astype(jnp.bfloat16)   # acts on SR rows
    w_xn_big = jnp.kron(eye_tb, w[:, C:]).astype(jnp.bfloat16)   # acts on x_noisy rows

    img_spec = pl.BlockSpec((row_tile, t_hw),
                            lambda bi, so, si: (bi, so * n_si + si))
    vec_spec = pl.BlockSpec((row_tile, 1), lambda bi, so, si: (bi, 0))
    wgt_spec = pl.BlockSpec((row_tile, row_tile), lambda bi, so, si: (0, 0))

    # One (1,1,1) partial-loss block per (batch tile, outer spatial tile);
    # last two dims of the block equal the full array dims -> tile-legal.
    n_parts = n_bt * n_so
    partial = pl.pallas_call(
        _p_losses_kernel,
        out_shape=jax.ShapeDtypeStruct((n_parts, 1, 1), jnp.float32),
        grid_spec=pltpu.PrefetchScalarGridSpec(
            num_scalar_prefetch=0,
            grid=(n_bt, n_so, n_si),
            in_specs=[
                vec_spec, vec_spec, vec_spec, vec_spec,     # alpha, sigma, film, bias
                img_spec, img_spec, img_spec,               # HR, SR, noise
                wgt_spec, wgt_spec,                         # w_sr_big, w_xn_big
            ],
            out_specs=pl.BlockSpec((1, 1, 1),
                                   lambda bi, so, si: (bi * n_so + so, 0, 0)),
        ),
        compiler_params=pltpu.CompilerParams(
            # batch-tile and outer-spatial axes parallel (megacore on v7x,
            # disjoint outputs); inner spatial axis is the reduction axis.
            dimension_semantics=("parallel", "parallel", "arbitrary"),
            vmem_limit_bytes=vmem_limit,
        ),
    )(alpha_rows, sigma_rows, film_rows, bias_rows,
      hr_f, sr_f, noise_f, w_sr_big, w_xn_big)

    return jnp.sum(partial)   # tiny XLA reduce over the partial losses


# ----------------------------- pure-JAX reference ------------------------------
def reference_loss(hr, sr, noise, cont_sqrt_alpha, w, bias, gamma):
    B, C, H, W = hr.shape
    a4 = cont_sqrt_alpha.reshape(B, 1, 1, 1)
    x_noisy = a4 * hr + jnp.sqrt(1.0 - a4 ** 2) * noise
    x_cat = jnp.concatenate([sr, x_noisy], axis=1).reshape(B, 2 * C, H * W)
    h = jnp.einsum("oc,bcp->bop", w, x_cat)
    a3 = cont_sqrt_alpha.reshape(B, 1, 1)
    x_recon = h * (1.0 + gamma.reshape(1, C, 1) * a3) + bias.reshape(1, C, 1)
    return jnp.sum(jnp.abs(noise.reshape(B, C, -1) - x_recon))


# ----------------------------- main --------------------------------------------
if __name__ == "__main__":
    B, C, H, W = 2, 4, 16, 16
    n_timestep = 100

    # set_new_noise_schedule(schedule='linear')
    betas = make_beta_schedule("linear", n_timestep, 1e-4, 2e-2)
    alphas = 1.0 - betas
    alphas_cumprod = np.cumprod(alphas, axis=0)
    sqrt_alphas_cumprod_prev = np.sqrt(np.append(1.0, alphas_cumprod))

    key = jax.random.PRNGKey(0)
    k_hr, k_sr, k_noise, k_t, k_a, k_w, k_b, k_g = jax.random.split(key, 8)

    hr = jax.random.normal(k_hr, (B, C, H, W), jnp.float32)        # x_in['HR']
    sr = jax.random.normal(k_sr, (B, C, H, W), jnp.float32)        # x_in['SR']
    noise = jax.random.normal(k_noise, (B, C, H, W), jnp.float32)  # sampled noise

    # t ~ randint(1, num_timesteps+1); a ~ U(prev[t-1], prev[t]) per batch
    t = int(jax.random.randint(k_t, (), 1, n_timestep + 1))
    lo = float(min(sqrt_alphas_cumprod_prev[t - 1], sqrt_alphas_cumprod_prev[t]))
    hi = float(max(sqrt_alphas_cumprod_prev[t - 1], sqrt_alphas_cumprod_prev[t]))
    cont_sqrt_alpha = jax.random.uniform(k_a, (B,), jnp.float32, minval=lo, maxval=hi)

    # deterministic synthetic denoise_fn parameters (1x1 conv 2C -> C + FiLM)
    w = jax.random.normal(k_w, (C, 2 * C), jnp.float32) * 0.1
    bias = jax.random.normal(k_b, (C, 1), jnp.float32) * 0.01
    gamma = jax.random.normal(k_g, (C, 1), jnp.float32) * 0.1

    loss = gaussian_diffusion_p_losses(hr, sr, noise, cont_sqrt_alpha, w, bias, gamma)
    loss = jax.block_until_ready(loss)

    ref = reference_loss(hr, sr, noise, cont_sqrt_alpha, w, bias, gamma)
    # images are f32 end-to-end now; only the 1x1-conv runs on the bf16 MXU path
    assert np.allclose(np.asarray(loss), np.asarray(ref), rtol=5e-3, atol=1.0), (loss, ref)
    print("KERNEL_OK")
</pallas_src>

<mosaic_0001>
module attributes {stable_mosaic.version = 11 : i64} {
  func.func @_p_losses_kernel(%arg0: i32, %arg1: i32, %arg2: i32, %arg3: memref<8x1xf32, #tpu.memory_space<vmem>>, %arg4: memref<8x1xf32, #tpu.memory_space<vmem>>, %arg5: memref<8x1xf32, #tpu.memory_space<vmem>>, %arg6: memref<8x1xf32, #tpu.memory_space<vmem>>, %arg7: memref<8x128xf32, #tpu.memory_space<vmem>>, %arg8: memref<8x128xf32, #tpu.memory_space<vmem>>, %arg9: memref<8x128xf32, #tpu.memory_space<vmem>>, %arg10: memref<8x8xbf16, #tpu.memory_space<vmem>>, %arg11: memref<8x8xbf16, #tpu.memory_space<vmem>>, %arg12: memref<1x1x1xf32, #tpu.memory_space<vmem>>) attributes {dimension_semantics = [#tpu.dimension_semantics<parallel>, #tpu.dimension_semantics<parallel>, #tpu.dimension_semantics<arbitrary>], iteration_bounds = array<i64: 1, 2, 1>, scalar_prefetch = 0 : i64, scratch_operands = 0 : i64, tpu.core_type = #tpu.core_type<tc>, window_params = [{transform_indices = @transform_0, window_bounds = array<i64: 8, 1>}, {transform_indices = @transform_1, window_bounds = array<i64: 8, 1>}, {transform_indices = @transform_2, window_bounds = array<i64: 8, 1>}, {transform_indices = @transform_3, window_bounds = array<i64: 8, 1>}, {transform_indices = @transform_4, window_bounds = array<i64: 8, 128>}, {transform_indices = @transform_5, window_bounds = array<i64: 8, 128>}, {transform_indices = @transform_6, window_bounds = array<i64: 8, 128>}, {pipeline_mode = #tpu.pipeline_mode<synchronous>, transform_indices = @transform_7, window_bounds = array<i64: 8, 8>}, {pipeline_mode = #tpu.pipeline_mode<synchronous>, transform_indices = @transform_8, window_bounds = array<i64: 8, 8>}, {transform_indices = @transform_9, window_bounds = array<i64: 1, 1, 1>}]} {
    %c0 = arith.constant 0 : index
    %c0_0 = arith.constant 0 : index
    %0 = vector.load %arg7[%c0, %c0_0] : memref<8x128xf32, #tpu.memory_space<vmem>>, vector<8x128xf32>
    %c0_1 = arith.constant 0 : index
    %c0_2 = arith.constant 0 : index
    %1 = vector.load %arg8[%c0_1, %c0_2] : memref<8x128xf32, #tpu.memory_space<vmem>>, vector<8x128xf32>
    %c0_3 = arith.constant 0 : index
    %c0_4 = arith.constant 0 : index
    %2 = vector.load %arg9[%c0_3, %c0_4] : memref<8x128xf32, #tpu.memory_space<vmem>>, vector<8x128xf32>
    %c0_5 = arith.constant 0 : index
    %c0_6 = arith.constant 0 : index
    %3 = vector.load %arg3[%c0_5, %c0_6] : memref<8x1xf32, #tpu.memory_space<vmem>>, vector<8x1xf32>
    %4 = vector.broadcast %3 : vector<8x1xf32> to vector<8x128xf32>
    %5 = arith.mulf %4, %0 : vector<8x128xf32>
    %c0_7 = arith.constant 0 : index
    %c0_8 = arith.constant 0 : index
    %6 = vector.load %arg4[%c0_7, %c0_8] : memref<8x1xf32, #tpu.memory_space<vmem>>, vector<8x1xf32>
    %7 = vector.broadcast %6 : vector<8x1xf32> to vector<8x128xf32>
    %8 = arith.mulf %7, %2 : vector<8x128xf32>
    %9 = arith.addf %5, %8 : vector<8x128xf32>
    %c0_9 = arith.constant 0 : index
    %c0_10 = arith.constant 0 : index
    %10 = vector.load %arg10[%c0_9, %c0_10] : memref<8x8xbf16, #tpu.memory_space<vmem>>, vector<8x8xbf16>
    %11 = arith.truncf %1 : vector<8x128xf32> to vector<8x128xbf16>
    %cst = arith.constant dense<0.000000e+00> : vector<8x128xf32>
    %12 = tpu.matmul %10, %11, %cst {dimension_numbers = #tpu.dot_dimension_numbers<[1], [0], [0], [1], [0, 0, 1, 1], [], []>} : vector<8x8xbf16>, vector<8x128xbf16>, vector<8x128xf32> -> vector<8x128xf32>
    %c0_11 = arith.constant 0 : index
    %c0_12 = arith.constant 0 : index
    %13 = vector.load %arg11[%c0_11, %c0_12] : memref<8x8xbf16, #tpu.memory_space<vmem>>, vector<8x8xbf16>
    %14 = arith.truncf %9 : vector<8x128xf32> to vector<8x128xbf16>
    %cst_13 = arith.constant dense<0.000000e+00> : vector<8x128xf32>
    %15 = tpu.matmul %13, %14, %cst_13 {dimension_numbers = #tpu.dot_dimension_numbers<[1], [0], [0], [1], [0, 0, 1, 1], [], []>} : vector<8x8xbf16>, vector<8x128xbf16>, vector<8x128xf32> -> vector<8x128xf32>
    %16 = arith.addf %12, %15 : vector<8x128xf32>
    %c0_14 = arith.constant 0 : index
    %c0_15 = arith.constant 0 : index
    %17 = vector.load %arg5[%c0_14, %c0_15] : memref<8x1xf32, #tpu.memory_space<vmem>>, vector<8x1xf32>
    %18 = vector.broadcast %17 : vector<8x1xf32> to vector<8x128xf32>
    %19 = arith.mulf %16, %18 : vector<8x128xf32>
    %c0_16 = arith.constant 0 : index
    %c0_17 = arith.constant 0 : index
    %20 = vector.load %arg6[%c0_16, %c0_17] : memref<8x1xf32, #tpu.memory_space<vmem>>, vector<8x1xf32>
    %21 = vector.broadcast %20 : vector<8x1xf32> to vector<8x128xf32>
    %22 = arith.addf %19, %21 : vector<8x128xf32>
    %23 = arith.subf %2, %22 : vector<8x128xf32>
    %24 = math.absf %23 : vector<8x128xf32>
    %25 = vector.shape_cast %24 : vector<8x128xf32> to vector<1x8x128xf32>
    %cst_18 = arith.constant dense<0.000000e+00> : vector<1xf32>
    %26 = vector.multi_reduction <add>, %25, %cst_18 [1, 2] : vector<1x8x128xf32> to vector<1xf32>
    %27 = vector.shape_cast %26 : vector<1xf32> to vector<1x1x1xf32>
    %28 = vector.extract %27[0, 0, 0] : f32 from vector<1x1x1xf32>
    %c0_i32 = arith.constant 0 : i32
    %29 = arith.cmpi eq, %arg2, %c0_i32 : i32
    %30 = arith.extui %29 : i1 to i32
    %c0_i32_19 = arith.constant 0 : i32
    %31 = arith.cmpi ne, %30, %c0_i32_19 : i32
    scf.if %31 {
      %cst_22 = arith.constant 0.000000e+00 : f32
      %35 = vector.broadcast %cst_22 : f32 to vector<1x1x1xf32>
      %36 = vector.broadcast %28 : f32 to vector<1x1x1xf32>
      %37 = arith.addf %35, %36 : vector<1x1x1xf32>
      %c0_23 = arith.constant 0 : index
      %c0_24 = arith.constant 0 : index
      %c0_25 = arith.constant 0 : index
      %38 = vector.load %arg12[%c0_23, %c0_24, %c0_25] : memref<1x1x1xf32, #tpu.memory_space<vmem>>, vector<1x1x1xf32>
      tpu.vector_store %arg12[%c0_23, %c0_24, %c0_25], %37 {strides = array<i32>} : memref<1x1x1xf32, #tpu.memory_space<vmem>>, vector<1x1x1xf32>,
    } else {
    }
    %c0_i32_20 = arith.constant 0 : i32
    %32 = arith.cmpi sgt, %arg2, %c0_i32_20 : i32
    %33 = arith.extui %32 : i1 to i32
    %c0_i32_21 = arith.constant 0 : i32
    %34 = arith.cmpi ne, %33, %c0_i32_21 : i32
    scf.if %34 {
      %c0_22 = arith.constant 0 : index
      %c0_23 = arith.constant 0 : index
      %c0_24 = arith.constant 0 : index
      %35 = vector.load %arg12[%c0_22, %c0_23, %c0_24] : memref<1x1x1xf32, #tpu.memory_space<vmem>>, vector<1x1x1xf32>
      %36 = vector.broadcast %28 : f32 to vector<1x1x1xf32>
      %37 = arith.addf %35, %36 : vector<1x1x1xf32>
      %c0_25 = arith.constant 0 : index
      %c0_26 = arith.constant 0 : index
      %c0_27 = arith.constant 0 : index
      %38 = vector.load %arg12[%c0_25, %c0_26, %c0_27] : memref<1x1x1xf32, #tpu.memory_space<vmem>>, vector<1x1x1xf32>
      tpu.vector_store %arg12[%c0_25, %c0_26, %c0_27], %37 {strides = array<i32>} : memref<1x1x1xf32, #tpu.memory_space<vmem>>, vector<1x1x1xf32>,
    } else {
    }
    return
  }
  func.func @transform_0(%arg0: i32, %arg1: i32, %arg2: i32) -> (i32, i32) {
    %c0_i32 = arith.constant 0 : i32
    %c0_i32_0 = arith.constant 0 : i32
    return %arg0, %c0_i32 : i32, i32
  }
  func.func @transform_1(%arg0: i32, %arg1: i32, %arg2: i32) -> (i32, i32) {
    %c0_i32 = arith.constant 0 : i32
    %c0_i32_0 = arith.constant 0 : i32
    return %arg0, %c0_i32 : i32, i32
  }
  func.func @transform_2(%arg0: i32, %arg1: i32, %arg2: i32) -> (i32, i32) {
    %c0_i32 = arith.constant 0 : i32
    %c0_i32_0 = arith.constant 0 : i32
    return %arg0, %c0_i32 : i32, i32
  }
  func.func @transform_3(%arg0: i32, %arg1: i32, %arg2: i32) -> (i32, i32) {
    %c0_i32 = arith.constant 0 : i32
    %c0_i32_0 = arith.constant 0 : i32
    return %arg0, %c0_i32 : i32, i32
  }
  func.func @transform_4(%arg0: i32, %arg1: i32, %arg2: i32) -> (i32, i32) {
    %c1_i32 = arith.constant 1 : i32
    %0 = arith.muli %arg1, %c1_i32 : i32
    %1 = arith.addi %0, %arg2 : i32
    %c0_i32 = arith.constant 0 : i32
    return %arg0, %1 : i32, i32
  }
  func.func @transform_5(%arg0: i32, %arg1: i32, %arg2: i32) -> (i32, i32) {
    %c1_i32 = arith.constant 1 : i32
    %0 = arith.muli %arg1, %c1_i32 : i32
    %1 = arith.addi %0, %arg2 : i32
    %c0_i32 = arith.constant 0 : i32
    return %arg0, %1 : i32, i32
  }
  func.func @transform_6(%arg0: i32, %arg1: i32, %arg2: i32) -> (i32, i32) {
    %c1_i32 = arith.constant 1 : i32
    %0 = arith.muli %arg1, %c1_i32 : i32
    %1 = arith.addi %0, %arg2 : i32
    %c0_i32 = arith.constant 0 : i32
    return %arg0, %1 : i32, i32
  }
  func.func @transform_7(%arg0: i32, %arg1: i32, %arg2: i32) -> (i32, i32) {
    %c0_i32 = arith.constant 0 : i32
    %c0_i32_0 = arith.constant 0 : i32
    %c0_i32_1 = arith.constant 0 : i32
    return %c0_i32, %c0_i32_0 : i32, i32
  }
  func.func @transform_8(%arg0: i32, %arg1: i32, %arg2: i32) -> (i32, i32) {
    %c0_i32 = arith.constant 0 : i32
    %c0_i32_0 = arith.constant 0 : i32
    %c0_i32_1 = arith.constant 0 : i32
    return %c0_i32, %c0_i32_0 : i32, i32
  }
  func.func @transform_9(%arg0: i32, %arg1: i32, %arg2: i32) -> (i32, i32, i32) {
    %c2_i32 = arith.constant 2 : i32
    %0 = arith.muli %arg0, %c2_i32 : i32
    %1 = arith.addi %0, %arg1 : i32
    %c0_i32 = arith.constant 0 : i32
    %c0_i32_0 = arith.constant 0 : i32
    %c0_i32_1 = arith.constant 0 : i32
    return %1, %c0_i32, %c0_i32_0 : i32, i32, i32
  }
}

</mosaic_0001>

<bundles_post_ra>
// kernel: tpu_custom_call.1
= control target key start
LH: loop header
LB: loop body
LE: loop exit
PB: predicated region body
PF: predicated region fallthrough
CT: control target
= control target key end

     0   :  { %s1238_s0 = inlined_call_operand.vmem [shape: f32[8,1], index: 0, kind: input, shape index: {}]   ;;  %s1239_s1 = inlined_call_operand.vmem [shape: f32[8,1], index: 1, kind: input, shape index: {}]   ;;  %s1240_s2 = inlined_call_operand.vmem [shape: f32[8,1], index: 2, kind: input, shape index: {}]   ;;  %s1241_s3 = inlined_call_operand.vmem [shape: f32[8,1], index: 3, kind: input, shape index: {}]   ;;  %s1242_s4 = inlined_call_operand.vmem [shape: f32[8,256], index: 4, kind: input, shape index: {}]   ;;  %s1243_s5 = inlined_call_operand.vmem [shape: f32[8,256], index: 5, kind: input, shape index: {}]   ;;  %s1244_s6 = inlined_call_operand.hbm [shape: f32[8,256], index: 6, kind: input, shape index: {}]   ;;  %s1245_s7 = inlined_call_operand.vmem [shape: bf16[8,8], index: 7, kind: input, shape index: {}]   ;;  %s1246_s8 = inlined_call_operand.hbm [shape: bf16[8,8], index: 8, kind: input, shape index: {}]   ;;  %s1247_s9 = inlined_call_operand.vmem [shape: f32[2,1,1], index: 9, kind: output, shape index: {}]  }
   0x1   :  { %1248 = sst [smem:[#allocation8_spill]] %s1246_s8 }
   0x2   :  { %1249 = sst [smem:[#allocation9_spill]] %s1247_s9 }
   0x3   :  { %14 = vsyncpa [#allocation3], 0 }
   0x4   :  { %16 = vsyncpa [#allocation3 + $0x1], 0 }
   0x5   :  { %17 = vsyncpa [#allocation5], 0  ;;  %s1093_s30 = smov 0   ;;  %s1095_s10 = smov 0  }
   0x6   :  { %s1097_s11 = smov 0   ;;  %s1099_s12 = smov 0  }
   0x7   :  { %s1101_s13 = smov 0   ;;  %s1103_s14 = smov 0  }
   0x8 LB: > { %s834_s15 = sadd.s32 4294967295, %s1039_s14   ;;  %p230_p0 = scmp.ne.s32.totalorder %s1023_s10, %s1019_s30  ;;  %s1039_s14 = sphi %s1103_s14, %s23_s14   ;;  %s1035_s13 = sphi %s1101_s13, %s1260_s13   ;;  %s1031_s12 = sphi %s1099_s12, %s1259_s12   ;;  %s1027_s11 = sphi %s1097_s11, %s1258_s11   ;;  %s1023_s10 = sphi %s1095_s10, %s1257_s10   ;;  %s1019_s30 = sphi %s1093_s30, %s1256_s30  }
   0x9   : > { %p1123_p1 = scmp.eq.s32.totalorder %s834_s15, 0  ;;  %p836_p2 = scmp.ge.s32.totalorder %s1039_s14, 1 }
   0xa   : > { %p313_p3 = scmp.lt.s32.totalorder %s1039_s14, 3  ;;  %s1252_s8 = sld [smem:[#allocation8_spill]] }
   0xb   : > { %p1131_p4 = por %p1123_p1, %p230_p0  ;;  %s1041_s22 = smov [#allocation4]  }
   0xc   : > { %p1138_p5 = pnand %p836_p2, %p313_p3  ;;  %s358_s23 = sshll.u32 %s1041_s22, 4  ;;  %s359_s23 = int_to_ptr.vmem [resolvable:$true] %s358_s23 }
   0xd   : > { %s38_s24 = sadd.s32 1, %s1035_s13  ;;  %p224_p9 = scmp.ne.s32.totalorder %s1027_s11, %s1023_s10 }
   0xe   : > { %p862_p6 = pneg %p1138_p5  ;;  %p40_p8 = scmp.ge.s32.totalorder %s38_s24, 2 }
   0xf   : > { %p225_p10 = scmp.eq.s32.totalorder %s1039_s14, 0  ;;  %s217_s25 = sadd.s32 1, %s1027_s11 }
  0x10   : > { %s356_s20 = sshll.u32 %s1252_s8, 4  ;;  %p863_p7 = pnand %p862_p6, %p1123_p1  ;;  %s357_s20 = int_to_ptr.hbm [resolvable:$true] %s356_s20 }
  0x11   : > { %s1262_s24 = smov (%p40_p8, %s38_s24), 0  ;;  %p1153_p11 = por %p225_p10, %p224_p9 }
  0x12   : > { %865 = dma.hbm_to_vmem [thread:$0]  (!%p863_p7), %s357_s20, 64, %s359_s23, [#allocation5]  }
  0x13   : > { %s213_s27 = ssub.s32 %s1035_s13, %s1262_s24  ;;  %s395_s28 = sand.u32 1, %s1027_s11  }
  0x14   : > { %p215_p12 = scmp.eq.s32.totalorder %s213_s27, 0  ;;  %p871_p13 = scmp.lt.s32.totalorder %s1039_s14, 2 }
  0x15   : > { %s843_s29 = sshll.u32 %s395_s28, 3  ;;  %s844_s30 = sshll.u32 %s1035_s13, 3 }
  0x16   : > { %s1163_s15 = scalar_select %p215_p12, %s1027_s11, %s217_s25  }
  0x17   : > { %s406_s20 = scalar_lea.hbm %s1244_s6, %s844_s30  ;;  %s399_s23 = scalar_lea.vmem [#allocation2], %s843_s29 }
  0x18   : > { %s408_s22 = sshll.u32 %s406_s20, 4  ;;  %s410_s8 = sshll.u32 %s399_s23, 4  ;;  %s409_s22 = int_to_ptr.hbm [resolvable:$true] %s408_s22  ;;  %s411_s8 = int_to_ptr.vmem [resolvable:$true] %s410_s8 }
  0x19   : > { %p867_p0 = pnand %p871_p13, %p1153_p11  ;;  %s396_s9 = scalar_lea.sflag [#allocation3], %s395_s28 }
  0x1a   : > { %419 = sbr.rel (%p1138_p5) target bundleno = 485 (0x1e5), region = 56  ;;  %s421_s25 = sand.u32 (!%p1138_p5), 1, %s1023_s10  }
  0x1b   : > { %869 = dma.hbm_to_vmem [thread:$0]  (!%p867_p0), %s409_s22, 128, %s411_s8, %s396_s9  }
  0x1c   : > { %s1173_s27 = sshll.u32 (!%p1138_p5), %s421_s25, 3  ;;  %s422_s18 = scalar_lea.sflag (!%p1138_p5), [#allocation3], %s421_s25 }
  0x1d   : > { %s425_s30 = scalar_lea.vmem (!%p1138_p5), [#allocation2], %s1173_s27 }
  0x1f   : > { %1010 = dma.done.wait (%p1131_p4), %s422_s18, 128  }
  0x20   : > { %1012 = vsyncadd (%p1131_p4), %s422_s18, 4294967168 }
  0x21   : > { %1014 = dma.done.wait (%p1123_p1), [#allocation5], 64  }
  0x22   : > { %1016 = vsyncadd (%p1123_p1), [#allocation5], 4294967232  ;;  %v1042_v0 = vmov 0   ;;  %v548_v1 = vld [vmem:[%s1238_s0] sm:$0xff]  ;;  %p519_p2 = scmp.lt.s32.totalorder %s1031_s12, 1  ;;  %vm571_vm0 = vcmask 1043456  }
  0x23   : > { %923 = vset.pattern.permute.xlu0 %v1042_v0  ;;  %924 = vset.pattern.permute.xlu1 %v1042_v0  ;;  %v555_v2 = vld [vmem:[%s1239_s1] sm:$0xff]  ;;  %vm567_vm1 = vcmask 64512   ;;  %v565_v18 = vld [vmem:[#allocation4] sm:$0xf]  ;;  %s1255_s26 = sld [smem:[#allocation9_spill]]  ;;  %vm638_vm2 = vcmask 0  }
  0x24   : > { %551 = vperm.xlu0 %923, %v548_v1   ;;  %s1264_s12 = smov (!%p519_p2, %s1031_s12), 1  ;;  %v563_v6 = vld [vmem:[%s1245_s7] sm:$0xf] }
  0x25   : > { %s848_s16 = sshll.u32 %s1264_s12, 3  ;;  %v607_v7 = vld [vmem:[%s1240_s2] sm:$0xff] }
  0x26   : > { %s534_s29 = scalar_lea.vmem %s1243_s5, %s848_s16  ;;  %610 = vperm.xlu1 %924, %v607_v7   ;;  %v614_v8 = vld [vmem:[%s1241_s3] sm:$0xff]  ;;  %s524_s21 = scalar_lea.vmem %s1242_s4, %s848_s16 }
  0x27   : > { %v546_v3 = vld [vmem:[%s534_s29] sm:$0xff] }
  0x28   : > { %v564_v4 = vpack.c.bf16 %v546_v3, %v546_v3  ;;  %v545_v10 = vld [vmem:[%s524_s21] sm:$0xff] }
  0x29   : > { %v547_v11 = vld [vmem:[%s425_s30] sm:$0xff]  ;;  %s541_s16 = scalar_lea.vmem %s1255_s26, %s1264_s12 }
  0x2a   : > { %v592_v5 = vsel %vm571_vm0, %v564_v4, 0 }
  0x2b   : > { %601 = vmatpush.bf16.msra.mxu1 %v592_v5 }
  0x2c   : > { %558 = vperm.xlu0 %923, %v555_v2  }
  0x2e   : > { %851 = vmatmul.msk.bf16.vlgmr.msra.gmra.mxu1 %vm567_vm1, %v563_v6  ;;  %617 = vperm.xlu1 %924, %v614_v8  }
  0x96   : > { %v552_v9 = vpop.permute.xlu0 %551 }
  0x97   : > { %v554_v13 = vmul.f32 %v552_v9, %v545_v10 }
  0x98   : > { %v611_v21 = vpop.permute.xlu1 %610 }
  0x9e   : > { %v559_v12 = vpop.permute.xlu0 %558 }
  0x9f   : > { %v561_v14 = vmul.f32 %v559_v12, %v547_v11 }
  0xa0   : > { %v618_v25 = vpop.permute.xlu1 %617 }
  0xa1   : > { %v562_v15 = vadd.f32 %v561_v14, %v554_v13 }
  0xa3   : > { %v566_v16 = vpack.c.bf16 %v562_v15, %v562_v15 }
  0xa5   : > { %v573_v17 = vsel %vm571_vm0, %v566_v16, 0 }
  0xa6   : > { %582 = vmatpush.bf16.msra.mxu0 %v573_v17 }
  0xa9   : > { %850 = vmatmul.msk.bf16.vlgmr.msra.gmra.mxu0 %vm567_vm1, %v565_v18 }
  0xab   : > { %v603_v19 = vpop.f32.mrf.mxu1 }
  0xb3   : > { %v605_v20 = vpop.f32.mrf.mxu1 }
 0x126   : > { %v584_v22 = vpop.f32.mrf.mxu0 }
 0x127   : > { %v604_v23 = vadd.f32 %v603_v19, %v584_v22 }
 0x129   : > { %v613_v24 = vmul.f32 %v611_v21, %v604_v23 }
 0x12b   : > { %v620_v26 = vadd.f32 %v618_v25, %v613_v24 }
 0x12d   : > { %v621_v27 = vsub.f32 %v547_v11, %v620_v26 }
 0x12e   : > { %v586_v28 = vpop.f32.mrf.mxu0 }
 0x12f   : > { %v622_v29 = vand.u32 2147483647, %v621_v27 }
 0x131   : > { %623 = vadd.xlane.f32.xlu2 %v622_v29 }
 0x1a4   : > { %v624_v30 = vpop.xlane.xlu2 %623 }
 0x1a5   : > { %v625_v31 = vrot.slane %v624_v30, 4 }
 0x1a7   : > { %v626_v32 = vadd.f32 %v625_v31, %v624_v30 }
 0x1a9   : > { %v627_v33 = vrot.slane %v626_v32, 2 }
 0x1ab   : > { %v628_v34 = vadd.f32 %v627_v33, %v626_v32 }
 0x1ad   : > { %v629_v35 = vrot.slane %v628_v34, 1 }
 0x1af   : > { %v630_v36 = vadd.f32 %v629_v35, %v628_v34 }
 0x1b1   : > { %854 = vpush %v630_v36 }
 0x1e2   : > { %s855_s17 = spop %854 }
 0x1e3   : > { %v636_v37 = vstv %s855_s17 }
 0x1e4   : > { %639 = vst.msk [vmem:[%s541_s16] sm:$0x1] %vm638_vm2, %v636_v37 }
 0x1e5 PF: > { %s23_s14 = sadd.s32 1, %s1039_s14   ;;  %s1256_s30 = smov %s1023_s10 }
 0x1e6   : > { %p20_p1 = scmp.ge.s32.totalorder %s23_s14, 4   ;;  %s1257_s10 = smov %s1027_s11 }
 0x1e7   : > { %s1258_s11 = smov %s1163_s15  ;;  %s1259_s12 = smov %s1035_s13 }
 0x1e8   : > { %s1260_s13 = smov %s1262_s24  ;;  %22 = sbr.rel (!%p20_p1) target bundleno = 8 (0x8), region = 126 }
 0x1ed   :  { %672 = vsyncpa [#allocation3], 1 }
 0x1ee   :  { %674 = vsyncpa [#allocation3 + $0x1], 1 }
 0x1ef   :  { %675 = vsyncpa [#allocation5], 1 }

</bundles_post_ra>
